<compile_context>
chip_gen: v7x
topology: tpu7x:2x2x1
jax: 0.10.0
libtpu: 0.0.40
codegen_flags: <defaults>
</compile_context>

<pallas_src>
import jax
import jax.numpy as jnp
from jax.experimental import pallas as pl
from jax.experimental.pallas import tpu as pltpu


# ------------------------------- helpers ------------------------------------

def _round_up(n, m):
    return ((n + m - 1) // m) * m


def _cdiv(a, b):
    return -(-a // b)


def _pad2(a, rows, cols):
    return jnp.pad(a, ((0, rows - a.shape[0]), (0, cols - a.shape[1])))


# ----------------------------- Pallas kernel --------------------------------

def _make_fused_kernel(return_features):
    """Build the fused kernel; `return_features` is static (separate variant
    compiled without the features output when False)."""

    def kernel(thresh_ref, x_ref, wb_ref, bb_ref, wcat_ref, simmask_ref,
               labels_ref, bc_ref, *out_refs):
        if return_features:
            logits_ref, feat_ref = out_refs
        else:
            (logits_ref,) = out_refs

        m_pad = simmask_ref.shape[-1]
        c_pad = logits_ref.shape[-1]
        thresh = thresh_ref[0, 0]

        # backbone: features = relu(x @ Wb + bb)
        # x is DMA'd as f32 and cast to bf16 here (MXU operand), f32 accumulate.
        f = jnp.dot(x_ref[...].astype(jnp.bfloat16), wb_ref[...],
                    preferred_element_type=jnp.float32)
        f = jnp.maximum(f + bb_ref[...], 0.0)                 # (B, F_PAD) f32

        if return_features:
            feat_ref[...] = f

        # Fused retrieve + classifier GEMM: wcat = [normalized keys^T | Wc]
        z = jnp.dot(f.astype(jnp.bfloat16), wcat_ref[...],
                    preferred_element_type=jnp.float32)       # (B, M_PAD+C_PAD)

        # cosine similarity = (f . k_hat) / max(||f||, 1e-8); padded cols masked
        inv_norm = jax.lax.rsqrt(
            jnp.maximum(jnp.sum(f * f, axis=-1, keepdims=True), 1e-16))
        sim = z[:, :m_pad] * inv_norm + simmask_ref[...]      # (B, M_PAD)
        nn_logits = z[:, m_pad:] + bc_ref[...]                # (B, C_PAD)

        conf = jnp.max(sim, axis=-1, keepdims=True)           # (B, 1)

        # first-argmax (torch tie-break) without the argmax primitive
        col = jax.lax.broadcasted_iota(jnp.int32, sim.shape, 1)
        best = jnp.min(jnp.where(sim >= conf, col, m_pad),
                       axis=-1, keepdims=True)                # (B, 1)
        onehot = (col == best).astype(jnp.float32)            # (B, M_PAD)

        # retrieved label (exact: class ids << 2^24) + one-hot memory logits
        label = jnp.sum(onehot * labels_ref[...], axis=-1,
                        keepdims=True).astype(jnp.int32)      # (B, 1)
        cls = jax.lax.broadcasted_iota(jnp.int32, (z.shape[0], c_pad), 1)
        memory_logits = (cls == label).astype(jnp.float32)    # (B, C_PAD)

        use_mem = conf >= thresh                               # (B, 1) bool
        out = jnp.where(use_mem, memory_logits, nn_logits)
        # stash the use-memory flag in the last (padded, dead) logits lane
        out = jnp.where(cls == (c_pad - 1), use_mem.astype(jnp.float32), out)
        logits_ref[...] = out

    return kernel


# --------------------------- one-time preparation ----------------------------

def prepare_classifier_params(wb, bb, wc, bc, mem_keys, mem_labels,
                              num_classes):
    """Hoisted out of the forward path: pad lane dims to 128, normalize the
    memory key bank (eps-clamped like torch cosine_similarity), build the pad
    mask / label row, concatenate the retrieve+classifier weight, cast MXU
    operands to bf16."""
    d_in, feature_dim = wb.shape
    memory_size = mem_keys.shape[0]

    f_pad = _round_up(max(feature_dim, 128), 128)
    c_pad = _round_up(num_classes + 1, 128)   # +1 guarantees a dead flag lane
    m_pad = _round_up(max(memory_size, 128), 128)

    wb_p = _pad2(wb.astype(jnp.float32), d_in, f_pad).astype(jnp.bfloat16)
    bb_p = _pad2(bb.reshape(1, -1).astype(jnp.float32), 1, f_pad)
    wc_p = _pad2(wc.astype(jnp.float32), f_pad, c_pad).astype(jnp.bfloat16)
    bc_p = _pad2(bc.reshape(1, -1).astype(jnp.float32), 1, c_pad)

    # cosine-similarity keys, eps-clamped like torch F.cosine_similarity
    norms = jnp.maximum(jnp.linalg.norm(mem_keys.astype(jnp.float32),
                                        axis=-1, keepdims=True), 1e-8)
    memk_n = mem_keys.astype(jnp.float32) / norms                 # (M, F)
    memk_t = _pad2(memk_n, m_pad, f_pad).T.astype(jnp.bfloat16)   # (F_PAD, M_PAD)

    # fused retrieve + classifier weight matrix (F_PAD, M_PAD + C_PAD)
    w_cat = jnp.concatenate([memk_t, wc_p], axis=1)

    sim_mask = jnp.where(jnp.arange(m_pad) < memory_size,
                         0.0, -1e30).reshape(1, m_pad).astype(jnp.float32)
    labels_row = jnp.zeros((1, m_pad), jnp.float32)
    labels_row = labels_row.at[0, :memory_size].set(
        mem_labels.astype(jnp.float32))

    return dict(wb=wb_p, bb=bb_p, w_cat=w_cat, bc=bc_p,
                sim_mask=sim_mask, labels=labels_row,
                d_in=d_in, feature_dim=feature_dim, num_classes=num_classes,
                f_pad=f_pad, c_pad=c_pad, m_pad=m_pad)


# ------------------------------ JAX wrapper ----------------------------------

def _pick_block_b(b, d_in, f_pad, c_pad, return_features,
                  max_block_b=1024, io_vmem_budget=48 << 20):
    """Balanced, budget-capped batch block: bounds pad waste to <8 rows, keeps
    double-buffered IO under ~48 MiB (safe on v7x's 64 MiB VMEM), and gives
    >=2 grid steps for b>=16 so v7x's two TensorCores both get work."""
    out_lanes = c_pad + (f_pad if return_features else 0)
    per_row = 2 * (d_in * 4) + 2 * (out_lanes * 4)     # double-buffered in+out
    cap = max(8, (io_vmem_budget // max(per_row, 1)) // 8 * 8)
    max_block_b = max(8, min(max_block_b, cap))
    min_blocks = 2 if b >= 16 else 1
    nb = max(_cdiv(b, max_block_b), min_blocks)
    block_b = _round_up(_cdiv(b, nb), 8)
    b_pad = _round_up(b, block_b)
    return block_b, b_pad


def enhanced_classifier_forward(x, params, confidence_threshold,
                                return_features=False, max_block_b=1024):
    """Mirrors EnhancedClassifier.forward (eval mode). Returns
    (final_logits, [features,] use_memory_mask); use_memory_mask[i]==1 <=>
    sources[i]=='memory'."""
    b = x.shape[0]
    d_in = params["d_in"]
    f_pad, c_pad, m_pad = params["f_pad"], params["c_pad"], params["m_pad"]
    num_classes = params["num_classes"]

    # glue: flatten NCHW; x stays f32 (cast to bf16 inside the kernel)
    x_flat = x.reshape(b, -1).astype(jnp.float32)
    block_b, b_pad = _pick_block_b(b, d_in, f_pad, c_pad, return_features,
                                   max_block_b=max_block_b)
    if b_pad != b:
        x_flat = jnp.pad(x_flat, ((0, b_pad - b), (0, 0)))
    nb = b_pad // block_b

    thresh = jnp.full((1, 1), confidence_threshold, dtype=jnp.float32)

    in_specs = [
        pl.BlockSpec(memory_space=pltpu.MemorySpace.SMEM),        # threshold
        pl.BlockSpec((block_b, d_in), lambda i: (i, 0)),          # x (f32)
        pl.BlockSpec((d_in, f_pad), lambda i: (0, 0)),            # Wb (bf16)
        pl.BlockSpec((1, f_pad), lambda i: (0, 0)),               # bb
        pl.BlockSpec((f_pad, m_pad + c_pad), lambda i: (0, 0)),   # [keys^T|Wc]
        pl.BlockSpec((1, m_pad), lambda i: (0, 0)),               # sim pad mask
        pl.BlockSpec((1, m_pad), lambda i: (0, 0)),               # labels row
        pl.BlockSpec((1, c_pad), lambda i: (0, 0)),               # bc
    ]

    out_specs = [pl.BlockSpec((block_b, c_pad), lambda i: (i, 0))]
    out_shape = [jax.ShapeDtypeStruct((b_pad, c_pad), jnp.float32)]
    if return_features:
        out_specs.append(pl.BlockSpec((block_b, f_pad), lambda i: (i, 0)))
        out_shape.append(jax.ShapeDtypeStruct((b_pad, f_pad), jnp.float32))

    # explicit VMEM budget -> vmem_limit_bytes
    out_lanes = c_pad + (f_pad if return_features else 0)
    weight_bytes = 2 * (d_in * f_pad * 2 + f_pad * (m_pad + c_pad) * 2
                        + (f_pad + 2 * m_pad + c_pad) * 4)
    io_bytes = 2 * block_b * (d_in * 4 + out_lanes * 4)
    scratch_bytes = 2 * block_b * (f_pad + m_pad + c_pad) * 4
    vmem_limit = int(min(max((weight_bytes + io_bytes + scratch_bytes) * 3 // 2,
                             32 << 20), 112 << 20))

    grid_spec = pltpu.PrefetchScalarGridSpec(
        num_scalar_prefetch=0,
        grid=(nb,),
        in_specs=in_specs,
        out_specs=tuple(out_specs),
    )

    outs = pl.pallas_call(
        _make_fused_kernel(return_features),
        grid_spec=grid_spec,
        out_shape=tuple(out_shape),
        compiler_params=pltpu.CompilerParams(
            dimension_semantics=("parallel",),
            vmem_limit_bytes=vmem_limit),
    )(thresh, x_flat, params["wb"], params["bb"], params["w_cat"],
      params["sim_mask"], params["labels"], params["bc"])

    logits_p = outs[0]
    final_logits = logits_p[:b, :num_classes]
    use_mem_mask = (logits_p[:b, c_pad - 1] > 0.5).astype(jnp.int32)
    if return_features:
        features = outs[1][:b, :params["feature_dim"]]
        return final_logits, features, use_mem_mask
    return final_logits, use_mem_mask


# --------------------------------- main --------------------------------------

if __name__ == "__main__":
    # small shapes consistent with the module
    B, C_IN, H, W = 2, 4, 16, 16
    FEATURE_DIM = 32
    NUM_CLASSES = 10
    MEMORY_SIZE = 64
    CONF_THRESHOLD = 0.8

    key = jax.random.PRNGKey(0)
    ks = jax.random.split(key, 7)

    x = jax.random.normal(ks[0], (B, C_IN, H, W), dtype=jnp.float32)

    d_in = C_IN * H * W
    # backbone Linear(d_in -> FEATURE_DIM) params
    wb = jax.random.normal(ks[1], (d_in, FEATURE_DIM), jnp.float32) * 0.02
    bb = jax.random.normal(ks[2], (1, FEATURE_DIM), jnp.float32) * 0.02
    # classifier Linear(FEATURE_DIM -> NUM_CLASSES) params (stored transposed)
    wc = jax.random.normal(ks[3], (FEATURE_DIM, NUM_CLASSES), jnp.float32) * 0.1
    bc = jax.random.normal(ks[4], (1, NUM_CLASSES), jnp.float32) * 0.1
    # memory module: key bank + stored class labels
    mem_keys = jax.random.normal(ks[5], (MEMORY_SIZE, FEATURE_DIM), jnp.float32)
    mem_labels = jax.random.randint(ks[6], (MEMORY_SIZE,), 0, NUM_CLASSES,
                                    dtype=jnp.int32)

    # one-time parameter preparation (hoisted out of the forward path)
    params = prepare_classifier_params(wb, bb, wc, bc, mem_keys, mem_labels,
                                       num_classes=NUM_CLASSES)

    # return_features=True variant
    final_logits, features, use_mem_mask = enhanced_classifier_forward(
        x, params, confidence_threshold=CONF_THRESHOLD, return_features=True)
    jax.block_until_ready((final_logits, features, use_mem_mask))

    # return_features=False variant (no features writeback compiled)
    logits_only, mask_only = enhanced_classifier_forward(
        x, params, confidence_threshold=CONF_THRESHOLD, return_features=False)
    jax.block_until_ready((logits_only, mask_only))

    # sources list (host-side glue, mirrors the PyTorch string list)
    sources = ["memory" if int(m) else "network"
               for m in jax.device_get(use_mem_mask)]

    assert final_logits.shape == (B, NUM_CLASSES)
    assert features.shape == (B, FEATURE_DIM)
    assert logits_only.shape == (B, NUM_CLASSES)
    assert len(sources) == B
    assert all(s in ("memory", "network") for s in sources)
    assert bool(jnp.all(jnp.isfinite(final_logits)))

    print("KERNEL_OK")
</pallas_src>

<mosaic_0001>
module attributes {stable_mosaic.version = 11 : i64} {
  func.func @kernel(%arg0: i32, %arg1: memref<1x1xf32, #tpu.memory_space<smem>>, %arg2: memref<8x1024xf32, #tpu.memory_space<vmem>>, %arg3: memref<1024x128xbf16, #tpu.memory_space<vmem>>, %arg4: memref<1x128xf32, #tpu.memory_space<vmem>>, %arg5: memref<128x256xbf16, #tpu.memory_space<vmem>>, %arg6: memref<1x128xf32, #tpu.memory_space<vmem>>, %arg7: memref<1x128xf32, #tpu.memory_space<vmem>>, %arg8: memref<1x128xf32, #tpu.memory_space<vmem>>, %arg9: memref<8x128xf32, #tpu.memory_space<vmem>>, %arg10: memref<8x128xf32, #tpu.memory_space<vmem>>) attributes {dimension_semantics = [#tpu.dimension_semantics<parallel>], iteration_bounds = array<i64: 1>, scalar_prefetch = 0 : i64, scratch_operands = 0 : i64, tpu.core_type = #tpu.core_type<tc>, window_params = [{transform_indices = @transform_0, window_bounds = array<i64: 1, 1>}, {transform_indices = @transform_1, window_bounds = array<i64: 8, 1024>}, {pipeline_mode = #tpu.pipeline_mode<synchronous>, transform_indices = @transform_2, window_bounds = array<i64: 1024, 128>}, {pipeline_mode = #tpu.pipeline_mode<synchronous>, transform_indices = @transform_3, window_bounds = array<i64: 1, 128>}, {pipeline_mode = #tpu.pipeline_mode<synchronous>, transform_indices = @transform_4, window_bounds = array<i64: 128, 256>}, {pipeline_mode = #tpu.pipeline_mode<synchronous>, transform_indices = @transform_5, window_bounds = array<i64: 1, 128>}, {pipeline_mode = #tpu.pipeline_mode<synchronous>, transform_indices = @transform_6, window_bounds = array<i64: 1, 128>}, {pipeline_mode = #tpu.pipeline_mode<synchronous>, transform_indices = @transform_7, window_bounds = array<i64: 1, 128>}, {transform_indices = @transform_8, window_bounds = array<i64: 8, 128>}, {transform_indices = @transform_9, window_bounds = array<i64: 8, 128>}]} {
    %c0 = arith.constant 0 : index
    %c0_0 = arith.constant 0 : index
    %0 = memref.load %arg1[%c0, %c0_0] : memref<1x1xf32, #tpu.memory_space<smem>>
    %c0_1 = arith.constant 0 : index
    %c0_2 = arith.constant 0 : index
    %1 = vector.load %arg2[%c0_1, %c0_2] : memref<8x1024xf32, #tpu.memory_space<vmem>>, vector<8x1024xf32>
    %2 = arith.truncf %1 : vector<8x1024xf32> to vector<8x1024xbf16>
    %c0_3 = arith.constant 0 : index
    %c0_4 = arith.constant 0 : index
    %3 = vector.load %arg3[%c0_3, %c0_4] : memref<1024x128xbf16, #tpu.memory_space<vmem>>, vector<1024x128xbf16>
    %cst = arith.constant dense<0.000000e+00> : vector<8x128xf32>
    %4 = tpu.matmul %2, %3, %cst {dimension_numbers = #tpu.dot_dimension_numbers<[1], [0], [0], [1], [0, 0, 1, 1], [], []>} : vector<8x1024xbf16>, vector<1024x128xbf16>, vector<8x128xf32> -> vector<8x128xf32>
    %c0_5 = arith.constant 0 : index
    %c0_6 = arith.constant 0 : index
    %5 = vector.load %arg4[%c0_5, %c0_6] : memref<1x128xf32, #tpu.memory_space<vmem>>, vector<1x128xf32>
    %6 = vector.broadcast %5 : vector<1x128xf32> to vector<8x128xf32>
    %7 = arith.addf %4, %6 : vector<8x128xf32>
    %cst_7 = arith.constant 0.000000e+00 : f32
    %8 = vector.broadcast %cst_7 : f32 to vector<8x128xf32>
    %9 = arith.maximumf %7, %8 : vector<8x128xf32>
    %c0_8 = arith.constant 0 : index
    %c0_9 = arith.constant 0 : index
    %10 = vector.load %arg10[%c0_8, %c0_9] : memref<8x128xf32, #tpu.memory_space<vmem>>, vector<8x128xf32>
    tpu.vector_store %arg10[%c0_8, %c0_9], %9 {strides = array<i32>} : memref<8x128xf32, #tpu.memory_space<vmem>>, vector<8x128xf32>,
    %11 = arith.truncf %9 : vector<8x128xf32> to vector<8x128xbf16>
    %c0_10 = arith.constant 0 : index
    %c0_11 = arith.constant 0 : index
    %12 = vector.load %arg5[%c0_10, %c0_11] : memref<128x256xbf16, #tpu.memory_space<vmem>>, vector<128x256xbf16>
    %cst_12 = arith.constant dense<0.000000e+00> : vector<8x256xf32>
    %13 = tpu.matmul %11, %12, %cst_12 {dimension_numbers = #tpu.dot_dimension_numbers<[1], [0], [0], [1], [0, 0, 1, 1], [], []>} : vector<8x128xbf16>, vector<128x256xbf16>, vector<8x256xf32> -> vector<8x256xf32>
    %14 = arith.mulf %9, %9 : vector<8x128xf32>
    %cst_13 = arith.constant dense<0.000000e+00> : vector<8xf32>
    %15 = vector.multi_reduction <add>, %14, %cst_13 [1] : vector<8x128xf32> to vector<8xf32>
    %16 = vector.shape_cast %15 : vector<8xf32> to vector<8x1xf32>
    %cst_14 = arith.constant 1.000000e-16 : f32
    %17 = vector.broadcast %cst_14 : f32 to vector<8x1xf32>
    %18 = arith.maximumf %16, %17 : vector<8x1xf32>
    %19 = math.rsqrt %18 : vector<8x1xf32>
    %20 = vector.extract_strided_slice %13 {offsets = [0, 0], sizes = [8, 128], strides = [1, 1]} : vector<8x256xf32> to vector<8x128xf32>
    %21 = vector.broadcast %19 : vector<8x1xf32> to vector<8x128xf32>
    %22 = arith.mulf %20, %21 : vector<8x128xf32>
    %c0_15 = arith.constant 0 : index
    %c0_16 = arith.constant 0 : index
    %23 = vector.load %arg6[%c0_15, %c0_16] : memref<1x128xf32, #tpu.memory_space<vmem>>, vector<1x128xf32>
    %24 = vector.broadcast %23 : vector<1x128xf32> to vector<8x128xf32>
    %25 = arith.addf %22, %24 : vector<8x128xf32>
    %26 = vector.extract_strided_slice %13 {offsets = [0, 128], sizes = [8, 128], strides = [1, 1]} : vector<8x256xf32> to vector<8x128xf32>
    %c0_17 = arith.constant 0 : index
    %c0_18 = arith.constant 0 : index
    %27 = vector.load %arg8[%c0_17, %c0_18] : memref<1x128xf32, #tpu.memory_space<vmem>>, vector<1x128xf32>
    %28 = vector.broadcast %27 : vector<1x128xf32> to vector<8x128xf32>
    %29 = arith.addf %26, %28 : vector<8x128xf32>
    %cst_19 = arith.constant dense<0xFF800000> : vector<8xf32>
    %30 = vector.multi_reduction <maximumf>, %25, %cst_19 [1] : vector<8x128xf32> to vector<8xf32>
    %31 = vector.shape_cast %30 : vector<8xf32> to vector<8x1xf32>
    %32 = tpu.iota {dimensions = array<i32: 1>} : vector<8x128xi32>
    %33 = vector.broadcast %31 : vector<8x1xf32> to vector<8x128xf32>
    %34 = arith.cmpf oge, %25, %33 : vector<8x128xf32>
    %c128_i32 = arith.constant 128 : i32
    %35 = vector.broadcast %c128_i32 : i32 to vector<8x128xi32>
    %36 = arith.select %34, %32, %35 : vector<8x128xi1>, vector<8x128xi32>
    %cst_20 = arith.constant dense<2147483647> : vector<8xi32>
    %37 = vector.multi_reduction <minsi>, %36, %cst_20 [1] : vector<8x128xi32> to vector<8xi32>
    %38 = vector.shape_cast %37 : vector<8xi32> to vector<8x1xi32>
    %39 = vector.broadcast %38 : vector<8x1xi32> to vector<8x128xi32>
    %40 = arith.cmpi eq, %32, %39 : vector<8x128xi32>
    %41 = arith.extui %40 : vector<8x128xi1> to vector<8x128xi32>
    %42 = arith.sitofp %41 : vector<8x128xi32> to vector<8x128xf32>
    %c0_21 = arith.constant 0 : index
    %c0_22 = arith.constant 0 : index
    %43 = vector.load %arg7[%c0_21, %c0_22] : memref<1x128xf32, #tpu.memory_space<vmem>>, vector<1x128xf32>
    %44 = vector.broadcast %43 : vector<1x128xf32> to vector<8x128xf32>
    %45 = arith.mulf %42, %44 : vector<8x128xf32>
    %cst_23 = arith.constant dense<0.000000e+00> : vector<8xf32>
    %46 = vector.multi_reduction <add>, %45, %cst_23 [1] : vector<8x128xf32> to vector<8xf32>
    %47 = vector.shape_cast %46 : vector<8xf32> to vector<8x1xf32>
    %48 = arith.fptosi %47 : vector<8x1xf32> to vector<8x1xi32>
    %49 = tpu.iota {dimensions = array<i32: 1>} : vector<8x128xi32>
    %50 = vector.broadcast %48 : vector<8x1xi32> to vector<8x128xi32>
    %51 = arith.cmpi eq, %49, %50 : vector<8x128xi32>
    %52 = arith.extui %51 : vector<8x128xi1> to vector<8x128xi32>
    %53 = arith.sitofp %52 : vector<8x128xi32> to vector<8x128xf32>
    %54 = vector.broadcast %0 : f32 to vector<8x1xf32>
    %55 = arith.cmpf oge, %31, %54 : vector<8x1xf32>
    %56 = vector.shape_cast %55 : vector<8x1xi1> to vector<8x1xi1>
    %57 = vector.broadcast %56 : vector<8x1xi1> to vector<8x128xi1>
    %58 = arith.select %57, %53, %29 : vector<8x128xi1>, vector<8x128xf32>
    %c127_i32 = arith.constant 127 : i32
    %59 = vector.broadcast %c127_i32 : i32 to vector<8x128xi32>
    %60 = arith.cmpi eq, %49, %59 : vector<8x128xi32>
    %61 = arith.extui %55 : vector<8x1xi1> to vector<8x1xi32>
    %62 = arith.sitofp %61 : vector<8x1xi32> to vector<8x1xf32>
    %63 = vector.shape_cast %62 : vector<8x1xf32> to vector<8x1xf32>
    %64 = vector.broadcast %63 : vector<8x1xf32> to vector<8x128xf32>
    %65 = arith.select %60, %64, %58 : vector<8x128xi1>, vector<8x128xf32>
    %c0_24 = arith.constant 0 : index
    %c0_25 = arith.constant 0 : index
    %66 = vector.load %arg9[%c0_24, %c0_25] : memref<8x128xf32, #tpu.memory_space<vmem>>, vector<8x128xf32>
    tpu.vector_store %arg9[%c0_24, %c0_25], %65 {strides = array<i32>} : memref<8x128xf32, #tpu.memory_space<vmem>>, vector<8x128xf32>,
    return
  }
  func.func @transform_0(%arg0: i32) -> (i32, i32) {
    %c0_i32 = arith.constant 0 : i32
    %c0_i32_0 = arith.constant 0 : i32
    %c0_i32_1 = arith.constant 0 : i32
    return %c0_i32, %c0_i32_0 : i32, i32
  }
  func.func @transform_1(%arg0: i32) -> (i32, i32) {
    %c0_i32 = arith.constant 0 : i32
    %c0_i32_0 = arith.constant 0 : i32
    return %arg0, %c0_i32 : i32, i32
  }
  func.func @transform_2(%arg0: i32) -> (i32, i32) {
    %c0_i32 = arith.constant 0 : i32
    %c0_i32_0 = arith.constant 0 : i32
    %c0_i32_1 = arith.constant 0 : i32
    return %c0_i32, %c0_i32_0 : i32, i32
  }
  func.func @transform_3(%arg0: i32) -> (i32, i32) {
    %c0_i32 = arith.constant 0 : i32
    %c0_i32_0 = arith.constant 0 : i32
    %c0_i32_1 = arith.constant 0 : i32
    return %c0_i32, %c0_i32_0 : i32, i32
  }
  func.func @transform_4(%arg0: i32) -> (i32, i32) {
    %c0_i32 = arith.constant 0 : i32
    %c0_i32_0 = arith.constant 0 : i32
    %c0_i32_1 = arith.constant 0 : i32
    return %c0_i32, %c0_i32_0 : i32, i32
  }
  func.func @transform_5(%arg0: i32) -> (i32, i32) {
    %c0_i32 = arith.constant 0 : i32
    %c0_i32_0 = arith.constant 0 : i32
    %c0_i32_1 = arith.constant 0 : i32
    return %c0_i32, %c0_i32_0 : i32, i32
  }
  func.func @transform_6(%arg0: i32) -> (i32, i32) {
    %c0_i32 = arith.constant 0 : i32
    %c0_i32_0 = arith.constant 0 : i32
    %c0_i32_1 = arith.constant 0 : i32
    return %c0_i32, %c0_i32_0 : i32, i32
  }
  func.func @transform_7(%arg0: i32) -> (i32, i32) {
    %c0_i32 = arith.constant 0 : i32
    %c0_i32_0 = arith.constant 0 : i32
    %c0_i32_1 = arith.constant 0 : i32
    return %c0_i32, %c0_i32_0 : i32, i32
  }
  func.func @transform_8(%arg0: i32) -> (i32, i32) {
    %c0_i32 = arith.constant 0 : i32
    %c0_i32_0 = arith.constant 0 : i32
    return %arg0, %c0_i32 : i32, i32
  }
  func.func @transform_9(%arg0: i32) -> (i32, i32) {
    %c0_i32 = arith.constant 0 : i32
    %c0_i32_0 = arith.constant 0 : i32
    return %arg0, %c0_i32 : i32, i32
  }
}

</mosaic_0001>

<bundles_post_ra>
// kernel: tpu_custom_call.1
= control target key start
LH: loop header
LB: loop body
LE: loop exit
PB: predicated region body
PF: predicated region fallthrough
CT: control target
= control target key end

     0   :  { %16 = vsyncpa [#allocation4], 0  ;;  %s1540_s0 = inlined_call_operand.<no memory space> [shape: f32[1,1], index: 0, kind: input, shape index: {}]   ;;  %s1541_s1 = inlined_call_operand.hbm [shape: f32[8,1024], index: 1, kind: input, shape index: {}]   ;;  %s1542_s2 = inlined_call_operand.hbm [shape: bf16[1024,128], index: 2, kind: input, shape index: {}]   ;;  %s1543_s3 = inlined_call_operand.vmem [shape: f32[1,128], index: 3, kind: input, shape index: {}]   ;;  %s1544_s4 = inlined_call_operand.hbm [shape: bf16[128,256], index: 4, kind: input, shape index: {}]   ;;  %s1545_s5 = inlined_call_operand.vmem [shape: f32[1,128], index: 5, kind: input, shape index: {}]   ;;  %s1546_s6 = inlined_call_operand.vmem [shape: f32[1,128], index: 6, kind: input, shape index: {}]   ;;  %s1547_s7 = inlined_call_operand.vmem [shape: f32[1,128], index: 7, kind: input, shape index: {}]   ;;  %s1548_s8 = inlined_call_operand.hbm [shape: f32[8,128], index: 8, kind: output, shape index: {0}]   ;;  %s1549_s9 = inlined_call_operand.hbm [shape: f32[8,128], index: 9, kind: output, shape index: {1}]  }
   0x1   :  { %17 = vsyncpa [#allocation7], 0 }
   0x2   :  { %18 = vsyncpa [#allocation5], 0 }
   0x3   :  { %19 = vsyncpa [#allocation11], 0  ;;  %s1404_s30 = smov [#allocation6]   ;;  %s1286_s13 = scalar_lea.hbm %s1542_s2, 8192 }
   0x4   :  { %s37_s10 = sshll.u32 %s1404_s30, 4  ;;  %p1287_p0 = scmp.ne.s32.totalorder %s1542_s2, %s1286_s13  ;;  %s38_s10 = int_to_ptr.vmem [resolvable:$true] %s37_s10 }
   0x5   :  { %p1290_p1 = scmp.lt.u32.totalorder %s1286_s13, %s1542_s2 }
   0x7   :  { %p1292_p2 = pnand %p1290_p1, %p1287_p0 }
   0x9   :  { %1295 = shalt.err (!%p1292_p2)
}
   0xa   :  { %s1296_s18 = scalar_lea.vmem %s38_s10, 8192  ;;  %p1301_p4 = scmp.lt.s32.totalorder %s38_s10, %s38_s10 }
   0xb   :  { %p1297_p3 = scmp.ne.s32.totalorder %s38_s10, %s1296_s18  ;;  %p1302_p5 = scmp.lt.s32.totalorder %s1296_s18, %s1296_s18 }
   0xd   :  { %p1303_p6 = por %p1302_p5, %p1301_p4 }
   0xf   :  { %p1304_p7 = pnand %p1303_p6, %p1297_p3 }
  0x11   :  { %1307 = shalt.err (!%p1304_p7)
}
  0x12   :  { %s1405_s19 = smov 64   ;;  %s1406_s20 = smov 4  }
  0x13   :  { %43 = dma.hbm_to_vmem [thread:$0]  %s1542_s2, 8192, %s38_s10, [#allocation7], %s1405_s19, %s1405_s19, %s1406_s20  }
  0x14   :  { %s1407_s23 = smov [#allocation3]   ;;  %s1408_s25 = smov [#allocation8]  }
  0x15   :  { %s28_s24 = sshll.u32 %s1407_s23, 4  ;;  %s51_s26 = sshll.u32 %s1408_s25, 4  ;;  %s29_s24 = int_to_ptr.vmem [resolvable:$true] %s28_s24  ;;  %s52_s26 = int_to_ptr.vmem [resolvable:$true] %s51_s26 }
  0x16   :  { %s1308_s29 = scalar_lea.hbm %s1541_s1, 1024 }
  0x17   :  { %p1309_p8 = scmp.ne.s32.totalorder %s1541_s1, %s1308_s29  ;;  %p1312_p9 = scmp.lt.u32.totalorder %s1308_s29, %s1541_s1 }
  0x19   :  { %p1314_p10 = pnand %p1312_p9, %p1309_p8 }
  0x1b   :  { %1317 = shalt.err (!%p1314_p10)
}
  0x1c   :  { %s1318_s2 = scalar_lea.vmem %s29_s24, 1024  ;;  %p1323_p12 = scmp.lt.s32.totalorder %s29_s24, %s29_s24 }
  0x1d   :  { %p1319_p11 = scmp.ne.s32.totalorder %s29_s24, %s1318_s2  ;;  %p1324_p13 = scmp.lt.s32.totalorder %s1318_s2, %s1318_s2 }
  0x1f   :  { %p1325_p0 = por %p1324_p13, %p1323_p12 }
  0x21   :  { %p1326_p1 = pnand %p1325_p0, %p1319_p11 }
  0x23   :  { %1329 = shalt.err (!%p1326_p1)
}
  0x24   :  { %31 = dma.hbm_to_vmem [thread:$0]  %s1541_s1, 1024, %s29_s24, [#allocation4]  }
  0x25   :  { %s1330_s17 = scalar_lea.hbm %s1544_s4, 2048 }
  0x26   :  { %p1331_p2 = scmp.ne.s32.totalorder %s1544_s4, %s1330_s17  ;;  %p1334_p3 = scmp.lt.u32.totalorder %s1330_s17, %s1544_s4 }
  0x28   :  { %p1336_p4 = pnand %p1334_p3, %p1331_p2 }
  0x2a   :  { %1339 = shalt.err (!%p1336_p4)
}
  0x2b   :  { %s1340_s22 = scalar_lea.vmem %s52_s26, 2048  ;;  %p1345_p6 = scmp.lt.s32.totalorder %s52_s26, %s52_s26 }
  0x2c   :  { %p1341_p5 = scmp.ne.s32.totalorder %s52_s26, %s1340_s22  ;;  %p1346_p7 = scmp.lt.s32.totalorder %s1340_s22, %s1340_s22 }
  0x2e   :  { %p1347_p8 = por %p1346_p7, %p1345_p6 }
  0x30   :  { %p1348_p9 = pnand %p1347_p8, %p1341_p5 }
  0x32   :  { %1351 = shalt.err (!%p1348_p9)
}
  0x33   :  { %s1409_s1 = smov 128   ;;  %s1410_s23 = smov 8  }
  0x34   :  { %57 = dma.hbm_to_vmem [thread:$0]  %s1544_s4, 2048, %s52_s26, [#allocation7], %s1409_s1, %s1409_s1, %s1410_s23  }
  0x35   :  { %1396 = dma.done.wait [#allocation4], 1024  }
  0x36   :  { %1397 = vsyncadd [#allocation4], 4294966272 }
  0x37   :  { %1398 = dma.done.wait [#allocation7], 10240  }
  0x38   :  { %1399 = vsyncadd [#allocation7], 4294957056  ;;  %v1196_v0 = vld [vmem:[#allocation6 + $0x40] sm:$0xff]   ;;  %v1200_v4 = vld [vmem:[#allocation6 + $0x48] sm:$0xff]   ;;  %s1413_s29 = smov [#allocation10]  }
  0x39   :  { %v1197_v1 = vld [vmem:[#allocation6 + $0xc0] sm:$0xff]   ;;  %1095 = vmatprep.subr.bf16.mxu0 %v1196_v0  ;;  %v1201_v5 = vld [vmem:[#allocation6 + $0xc8] sm:$0xff]   ;;  %v1204_v8 = vld [vmem:[#allocation6 + $0x50] sm:$0xff]   ;;  %s994_s30 = sshll.u32 %s1413_s29, 4  ;;  %s995_s30 = int_to_ptr.vmem [resolvable:$true] %s994_s30 }
  0x3a   :  { %v1198_v2 = vld [vmem:[#allocation6] sm:$0xff]   ;;  %1117 = vmatprep.subr.bf16.mxu1 %v1197_v1  ;;  %v1202_v6 = vld [vmem:[#allocation6 + $0x8] sm:$0xff]   ;;  %v1205_v9 = vld [vmem:[#allocation6 + $0xd0] sm:$0xff]   ;;  %s1352_s11 = scalar_lea.vmem %s995_s30, 128  ;;  %p1357_p11 = scmp.lt.s32.totalorder %s995_s30, %s995_s30 }
  0x3b   :  { %v1199_v3 = vld [vmem:[#allocation6 + $0x80] sm:$0xff]   ;;  %1096 = vmatpush3.bf16.msra.mxu0 %v1198_v2  ;;  %v1203_v7 = vld [vmem:[#allocation6 + $0x88] sm:$0xff]   ;;  %v1206_v10 = vld [vmem:[#allocation6 + $0x10] sm:$0xff]   ;;  %p1353_p10 = scmp.ne.s32.totalorder %s995_s30, %s1352_s11  ;;  %p1358_p12 = scmp.lt.s32.totalorder %s1352_s11, %s1352_s11 }
  0x3c   :  { %1118 = vmatpush3.bf16.msra.mxu1 %v1199_v3  ;;  %1097 = vmatprep.subr.bf16.mxu0 %v1200_v4  ;;  %v1207_v11 = vld [vmem:[#allocation6 + $0x90] sm:$0xff]   ;;  %v1208_v12 = vld [vmem:[#allocation6 + $0x58] sm:$0xff]   ;;  %v1212_v16 = vld [vmem:[#allocation6 + $0x60] sm:$0xff]  }
  0x3d   :  { %1119 = vmatprep.subr.bf16.mxu1 %v1201_v5  ;;  %v1209_v13 = vld [vmem:[#allocation6 + $0xd8] sm:$0xff]   ;;  %v1213_v17 = vld [vmem:[#allocation6 + $0xe0] sm:$0xff]   ;;  %v1216_v20 = vld [vmem:[#allocation6 + $0x68] sm:$0xff]   ;;  %p1359_p13 = por %p1358_p12, %p1357_p11 }
  0x3e   :  { %v1210_v14 = vld [vmem:[#allocation6 + $0x18] sm:$0xff]   ;;  %v1214_v18 = vld [vmem:[#allocation6 + $0x20] sm:$0xff]   ;;  %v1217_v21 = vld [vmem:[#allocation6 + $0xe8] sm:$0xff]  }
  0x3f   :  { %1098 = vmatpush3.bf16.msra.mxu0 %v1202_v6  ;;  %v1211_v15 = vld [vmem:[#allocation6 + $0x98] sm:$0xff]   ;;  %v1215_v19 = vld [vmem:[#allocation6 + $0xa0] sm:$0xff]   ;;  %v1218_v22 = vld [vmem:[#allocation6 + $0x28] sm:$0xff]   ;;  %p1360_p0 = pnand %p1359_p13, %p1353_p10 }
  0x40   :  { %1120 = vmatpush3.bf16.msra.mxu1 %v1203_v7  ;;  %1099 = vmatprep.subr.bf16.mxu0 %v1204_v8  ;;  %v1219_v23 = vld [vmem:[#allocation6 + $0xa8] sm:$0xff]   ;;  %v1220_v24 = vld [vmem:[#allocation6 + $0x70] sm:$0xff]   ;;  %v1224_v28 = vld [vmem:[#allocation6 + $0x78] sm:$0xff]  }
  0x41   :  { %1121 = vmatprep.subr.bf16.mxu1 %v1205_v9  ;;  %v1221_v25 = vld [vmem:[#allocation6 + $0xf0] sm:$0xff]   ;;  %v1225_v29 = vld [vmem:[#allocation6 + $0xf8] sm:$0xff]   ;;  %v76_v32 = vld [vmem:[#allocation3 + $0x8] sm:$0xff] }
  0x42   :  { %v1222_v26 = vld [vmem:[#allocation6 + $0x30] sm:$0xff]   ;;  %v1226_v30 = vld [vmem:[#allocation6 + $0x38] sm:$0xff]   ;;  %v75_v34 = vld [vmem:[#allocation3] sm:$0xff]  ;;  %v84_v35 = vpack.c.bf16 %v76_v32, %v76_v32  ;;  %v1411_v32 = vmov 0  }
  0x43   :  { %1100 = vmatpush3.bf16.msra.mxu0 %v1206_v10  ;;  %v1223_v27 = vld [vmem:[#allocation6 + $0xb0] sm:$0xff]   ;;  %v1227_v31 = vld [vmem:[#allocation6 + $0xb8] sm:$0xff]   ;;  %v83_v37 = vpack.c.bf16 %v75_v34, %v75_v34  ;;  %v1228_v40 = vld [vmem:[#allocation6 + $0x140] sm:$0xff]  }
  0x44   :  { %1122 = vmatpush3.bf16.msra.mxu1 %v1207_v11  ;;  %1101 = vmatprep.subr.bf16.mxu0 %v1208_v12  ;;  %v78_v33 = vld [vmem:[#allocation3 + $0x18] sm:$0xff]  ;;  %v77_v38 = vld [vmem:[#allocation3 + $0x10] sm:$0xff]  ;;  %v1229_v41 = vld [vmem:[#allocation6 + $0x1c0] sm:$0xff]  }
  0x45   :  { %1123 = vmatprep.subr.bf16.mxu1 %v1209_v13  ;;  %v86_v36 = vpack.c.bf16 %v78_v33, %v78_v33  ;;  %v85_v39 = vpack.c.bf16 %v77_v38, %v77_v38  ;;  %642 = vmatprep.mubr.bf16.mxu0 %v84_v35  ;;  %v1230_v42 = vld [vmem:[#allocation6 + $0x100] sm:$0xff]   ;;  %v1232_v44 = vld [vmem:[#allocation6 + $0x148] sm:$0xff]   ;;  %v1236_v48 = vld [vmem:[#allocation6 + $0x150] sm:$0xff]  }
  0x46   :  { %v1231_v43 = vld [vmem:[#allocation6 + $0x180] sm:$0xff]   ;;  %v1233_v45 = vld [vmem:[#allocation6 + $0x1c8] sm:$0xff]   ;;  %v1237_v49 = vld [vmem:[#allocation6 + $0x1d0] sm:$0xff]  }
  0x47   :  { %1102 = vmatpush3.bf16.msra.mxu0 %v1210_v14  ;;  %682 = vmatprep.mubr.bf16.mxu1 %v86_v36  ;;  %v1234_v46 = vld [vmem:[#allocation6 + $0x108] sm:$0xff]   ;;  %v1238_v50 = vld [vmem:[#allocation6 + $0x110] sm:$0xff]   ;;  %v1240_v52 = vld [vmem:[#allocation6 + $0x158] sm:$0xff]  }
  0x48   :  { %1124 = vmatpush3.bf16.msra.mxu1 %v1211_v15  ;;  %1103 = vmatprep.subr.bf16.mxu0 %v1212_v16  ;;  %v1235_v47 = vld [vmem:[#allocation6 + $0x188] sm:$0xff]   ;;  %v1239_v51 = vld [vmem:[#allocation6 + $0x190] sm:$0xff]   ;;  %v1241_v53 = vld [vmem:[#allocation6 + $0x1d8] sm:$0xff]  }
  0x49   :  { %1125 = vmatprep.subr.bf16.mxu1 %v1213_v17  ;;  %v1242_v54 = vld [vmem:[#allocation6 + $0x118] sm:$0xff]   ;;  %v1244_v56 = vld [vmem:[#allocation6 + $0x160] sm:$0xff]   ;;  %v1248_v60 = vld [vmem:[#allocation6 + $0x168] sm:$0xff]  }
  0x4a   :  { %v1243_v55 = vld [vmem:[#allocation6 + $0x198] sm:$0xff]   ;;  %v1245_v57 = vld [vmem:[#allocation6 + $0x1e0] sm:$0xff]   ;;  %v1249_v61 = vld [vmem:[#allocation6 + $0x1e8] sm:$0xff]  }
  0x4b   :  { %1104 = vmatpush3.bf16.msra.mxu0 %v1214_v18  ;;  %v1246_v58 = vld [vmem:[#allocation6 + $0x120] sm:$0xff]   ;;  %v1250_v62 = vld [vmem:[#allocation6 + $0x128] sm:$0xff]   ;;  %v1252_v0 = vld [vmem:[#allocation6 + $0x170] sm:$0xff]  }
  0x4c   :  { %1126 = vmatpush3.bf16.msra.mxu1 %v1215_v19  ;;  %1105 = vmatprep.subr.bf16.mxu0 %v1216_v20  ;;  %v1247_v59 = vld [vmem:[#allocation6 + $0x1a0] sm:$0xff]   ;;  %v1251_v63 = vld [vmem:[#allocation6 + $0x1a8] sm:$0xff]   ;;  %v1253_v1 = vld [vmem:[#allocation6 + $0x1f0] sm:$0xff]  }
  0x4d   :  { %1127 = vmatprep.subr.bf16.mxu1 %v1217_v21  ;;  %v1254_v2 = vld [vmem:[#allocation6 + $0x130] sm:$0xff]   ;;  %v1256_v4 = vld [vmem:[#allocation6 + $0x178] sm:$0xff]   ;;  %v80_v8 = vld [vmem:[#allocation3 + $0x28] sm:$0xff] }
  0x4e   :  { %v1255_v3 = vld [vmem:[#allocation6 + $0x1b0] sm:$0xff]   ;;  %v1257_v5 = vld [vmem:[#allocation6 + $0x1f8] sm:$0xff]   ;;  %v88_v10 = vpack.c.bf16 %v80_v8, %v80_v8  ;;  %v79_v12 = vld [vmem:[#allocation3 + $0x20] sm:$0xff] }
  0x4f   :  { %1106 = vmatpush3.bf16.msra.mxu0 %v1218_v22  ;;  %v1258_v6 = vld [vmem:[#allocation6 + $0x138] sm:$0xff]   ;;  %v81_v13 = vld [vmem:[#allocation3 + $0x30] sm:$0xff]  ;;  %v87_v14 = vpack.c.bf16 %v79_v12, %v79_v12  ;;  %v1260_v16 = vld [vmem:[#allocation8] ss:$8 sps:$4 sm:$0xff]  }
  0x50   :  { %1128 = vmatpush3.bf16.msra.mxu1 %v1219_v23  ;;  %1107 = vmatprep.subr.bf16.mxu0 %v1220_v24  ;;  %v1259_v7 = vld [vmem:[#allocation6 + $0x1b8] sm:$0xff]   ;;  %v89_v15 = vpack.c.bf16 %v81_v13, %v81_v13  ;;  %v1262_v17 = vld [vmem:[#allocation8 + $0x4] ss:$8 sps:$4 sm:$0xff]   ;;  %v1266_v21 = vld [vmem:[#allocation8 + $0x20] ss:$8 sps:$4 sm:$0xff]  }
  0x51   :  { %1129 = vmatprep.subr.bf16.mxu1 %v1221_v25  ;;  %v82_v9 = vld [vmem:[#allocation3 + $0x38] sm:$0xff]  ;;  %v1268_v20 = vld [vmem:[#allocation8 + $0x24] ss:$8 sps:$4 sm:$0xff]   ;;  %v1272_v25 = vld [vmem:[#allocation8 + $0x40] ss:$8 sps:$4 sm:$0xff]  }
  0x52   :  { %v90_v11 = vpack.c.bf16 %v82_v9, %v82_v9  ;;  %v1265_v18 = vld [vmem:[#allocation8 + $0x14] ss:$8 sps:$4 sm:$0xff]   ;;  %v1263_v19 = vld [vmem:[#allocation8 + $0x10] ss:$8 sps:$4 sm:$0xff]   ;;  %v1274_v24 = vld [vmem:[#allocation8 + $0x44] ss:$8 sps:$4 sm:$0xff]  }
  0x53   :  { %1108 = vmatpush3.bf16.msra.mxu0 %v1222_v26  ;;  %v1271_v22 = vld [vmem:[#allocation8 + $0x34] ss:$8 sps:$4 sm:$0xff]   ;;  %v1269_v23 = vld [vmem:[#allocation8 + $0x30] ss:$8 sps:$4 sm:$0xff]   ;;  %v1008_v35 = vld [vmem:[%s1543_s3] ss:$0 sm:$0xff] }
  0x54   :  { %1130 = vmatpush3.bf16.msra.mxu1 %v1223_v27  ;;  %1109 = vmatprep.subr.bf16.mxu0 %v1224_v28  ;;  %v1277_v26 = vld [vmem:[#allocation8 + $0x54] ss:$8 sps:$4 sm:$0xff]   ;;  %v1275_v27 = vld [vmem:[#allocation8 + $0x50] ss:$8 sps:$4 sm:$0xff]   ;;  %v1280_v28 = vld [vmem:[#allocation8 + $0x64] ss:$8 sps:$4 sm:$0xff]  }
  0x55   :  { %1131 = vmatprep.subr.bf16.mxu1 %v1225_v29  ;;  %v1278_v29 = vld [vmem:[#allocation8 + $0x60] ss:$8 sps:$4 sm:$0xff]  }
  0x57   :  { %1110 = vmatpush3.bf16.msra.mxu0 %v1226_v30  ;;  %v1283_v30 = vld [vmem:[#allocation8 + $0x74] ss:$8 sps:$4 sm:$0xff]  }
  0x58   :  { %1132 = vmatpush3.bf16.msra.mxu1 %v1227_v31  ;;  %1139 = vmatprep.subr.bf16.mxu0 %v1228_v40  ;;  %v1281_v31 = vld [vmem:[#allocation8 + $0x70] ss:$8 sps:$4 sm:$0xff]  }
  0x59   :  { %1161 = vmatprep.subr.bf16.mxu1 %v1229_v41 }
  0x5a   :  { %643 = vmatmul.mubr.bf16.vlgmr.msra.gmra.mrb[0].mxu0 %v83_v37 }
  0x5b   :  { %683 = vmatmul.mubr.bf16.vlgmr.msra.gmra.mrb[0].mxu1 %v85_v39  ;;  %1140 = vmatpush3.bf16.msra.mxu0 %v1230_v42 }
  0x5c   :  { %1162 = vmatpush3.bf16.msra.mxu1 %v1231_v43  ;;  %1141 = vmatprep.subr.bf16.mxu0 %v1232_v44 }
  0x5d   :  { %1163 = vmatprep.subr.bf16.mxu1 %v1233_v45  ;;  %722 = vmatprep.mubr.bf16.mxu0 %v88_v10 }
  0x5e   :  { %762 = vmatprep.mubr.bf16.mxu1 %v90_v11 }
  0x5f   :  { %1142 = vmatpush3.bf16.msra.mxu0 %v1234_v46 }
  0x60   :  { %1164 = vmatpush3.bf16.msra.mxu1 %v1235_v47  ;;  %1143 = vmatprep.subr.bf16.mxu0 %v1236_v48 }
  0x61   :  { %1165 = vmatprep.subr.bf16.mxu1 %v1237_v49 }
  0x63   :  { %1144 = vmatpush3.bf16.msra.mxu0 %v1238_v50 }
  0x64   :  { %1166 = vmatpush3.bf16.msra.mxu1 %v1239_v51  ;;  %1145 = vmatprep.subr.bf16.mxu0 %v1240_v52 }
  0x65   :  { %1167 = vmatprep.subr.bf16.mxu1 %v1241_v53 }
  0x67   :  { %1146 = vmatpush3.bf16.msra.mxu0 %v1242_v54 }
  0x68   :  { %1168 = vmatpush3.bf16.msra.mxu1 %v1243_v55  ;;  %1147 = vmatprep.subr.bf16.mxu0 %v1244_v56 }
  0x69   :  { %1169 = vmatprep.subr.bf16.mxu1 %v1245_v57 }
  0x6b   :  { %1148 = vmatpush3.bf16.msra.mxu0 %v1246_v58 }
  0x6c   :  { %1170 = vmatpush3.bf16.msra.mxu1 %v1247_v59  ;;  %1149 = vmatprep.subr.bf16.mxu0 %v1248_v60 }
  0x6d   :  { %1171 = vmatprep.subr.bf16.mxu1 %v1249_v61 }
  0x6f   :  { %1150 = vmatpush3.bf16.msra.mxu0 %v1250_v62 }
  0x70   :  { %1172 = vmatpush3.bf16.msra.mxu1 %v1251_v63  ;;  %1151 = vmatprep.subr.bf16.mxu0 %v1252_v0 }
  0x71   :  { %1173 = vmatprep.subr.bf16.mxu1 %v1253_v1  ;;  %v1089_v1 = vld [vmem:[%s1545_s5] ss:$0 sm:$0xff] }
  0x73   :  { %1152 = vmatpush3.bf16.msra.mxu0 %v1254_v2 }
  0x74   :  { %1174 = vmatpush3.bf16.msra.mxu1 %v1255_v3  ;;  %1153 = vmatprep.subr.bf16.mxu0 %v1256_v4 }
  0x75   :  { %1175 = vmatprep.subr.bf16.mxu1 %v1257_v5 }
  0x77   :  { %1154 = vmatpush3.bf16.msra.mxu0 %v1258_v6 }
  0x78   :  { %1176 = vmatpush3.bf16.msra.mxu1 %v1259_v7  ;;  %869 = vmatprep.subr.bf16.mxu0 %v1262_v17  ;;  %v934_v7 = vlaneseq }
  0x7a   :  { %723 = vmatmul.mubr.bf16.vlgmr.msra.gmra.mrb[4].mxu0 %v87_v14  ;;  %v935_v8 = vand.u32 127, %v934_v7 }
  0x7b   :  { %763 = vmatmul.mubr.bf16.vlgmr.msra.gmra.mrb[4].mxu1 %v89_v15  ;;  %870 = vmatpush1.bf16.msra.mxu0 %v1260_v16 }
  0x7c   :  { %871 = vmatprep.subr.bf16.mxu0 %v1265_v18  ;;  %901 = vmatprep.mubr.bf16.mxu0 %v1411_v32 }
  0x7f   :  { %872 = vmatpush1.bf16.msra.mxu0 %v1263_v19 }
  0x80   :  { %873 = vmatprep.subr.bf16.mxu0 %v1268_v20 }
  0x83   :  { %874 = vmatpush1.bf16.msra.mxu0 %v1266_v21 }
  0x84   :  { %875 = vmatprep.subr.bf16.mxu0 %v1271_v22  ;;  %v1092_v22 = vld [vmem:[%s1546_s6] ss:$0 sm:$0xff] }
  0x87   :  { %876 = vmatpush1.bf16.msra.mxu0 %v1269_v23  ;;  %v1412_v23 = vmov 0.0  }
  0x88   :  { %877 = vmatprep.subr.bf16.mxu0 %v1274_v24 }
  0x8b   :  { %878 = vmatpush1.bf16.msra.mxu0 %v1272_v25 }
  0x8c   :  { %879 = vmatprep.subr.bf16.mxu0 %v1277_v26 }
  0x8f   :  { %880 = vmatpush1.bf16.msra.mxu0 %v1275_v27 }
  0x90   :  { %881 = vmatprep.subr.bf16.mxu0 %v1280_v28 }
  0x93   :  { %882 = vmatpush1.bf16.msra.mxu0 %v1278_v29 }
  0x94   :  { %883 = vmatprep.subr.bf16.mxu0 %v1283_v30 }
  0x97   :  { %884 = vmatpush1.bf16.msra.mxu0 %v1281_v31 }
 0x12d   :  { %v1111_v33 = vpop.f32.mrb[0].mxu0 }
 0x12e   :  { %v1133_v34 = vpop.f32.mrb[0].mxu1  ;;  %v1112_v36 = vpop.f32.mrb[1].mxu0 }
 0x12f   :  { %v1134_v37 = vpop.f32.mrb[1].mxu1  ;;  %v1113_v38 = vadd.f32 %v1112_v36, %v1111_v33  ;;  %v1114_v40 = vpop.f32.mrb[2].mxu0 }
 0x130   :  { %v1135_v39 = vadd.f32 %v1134_v37, %v1133_v34  ;;  %v1136_v41 = vpop.f32.mrb[2].mxu1  ;;  %v1115_v42 = vpop.f32.mrb[3].mxu0 }
 0x131   :  { %v1137_v43 = vpop.f32.mrb[3].mxu1  ;;  %v645_v44 = vadd.f32 %v1113_v38, %v1008_v35 }
 0x133   :  { %v685_v45 = vadd.f32 %v1135_v39, %v645_v44 }
 0x14d   :  { %v1155_v46 = vpop.f32.mrb[4].mxu0 }
 0x14e   :  { %v1177_v47 = vpop.f32.mrb[4].mxu1  ;;  %v1156_v48 = vpop.f32.mrb[5].mxu0 }
 0x14f   :  { %v1157_v49 = vadd.f32 %v1156_v48, %v1155_v46  ;;  %v1178_v50 = vpop.f32.mrb[5].mxu1  ;;  %v1158_v51 = vpop.f32.mrb[6].mxu0 }
 0x150   :  { %v1179_v52 = vadd.f32 %v1178_v50, %v1177_v47  ;;  %v1180_v53 = vpop.f32.mrb[6].mxu1  ;;  %v1159_v54 = vpop.f32.mrb[7].mxu0 }
 0x151   :  { %v725_v55 = vadd.f32 %v1157_v49, %v685_v45  ;;  %v1181_v56 = vpop.f32.mrb[7].mxu1 }
 0x153   :  { %v765_v57 = vadd.f32 %v1179_v52, %v725_v55 }
 0x155   :  { %v770_v58 = vmax.f32 %v765_v57, 0.0 }
 0x157   :  { %771 = vst [vmem:[#allocation10] sm:$0xff] %v770_v58  ;;  %v910_v59 = vmul.f32 %v770_v58, %v770_v58  ;;  %v772_v60 = vpack.c.bf16 %v770_v58, %v770_v58 }
 0x159   :  { %911 = vadd.xlane.f32.xlu0 %v910_v59  ;;  %902 = vmatmul.mubr.bf16.vlgmr.msra.gmra.mrb[8].mxu0 %v772_v60 }
 0x1e6   :  { %v912_v61 = vpop.xlane.xlu0 %911 }
 0x1e7   :  { %v913_v62 = vmax.f32 %v912_v61, 1e-16 }
 0x1e9   :  { %1284 = vrsqrt.f32 %v913_v62 }
 0x1f3   :  { %v1285_v63 = vpop.eup %1284 }
 0x22c   :  { %v903_v0 = vpop.f32.mrb[8].mxu0 }
 0x22d   :  { %v915_v2 = vmul.f32 %v1285_v63, %v903_v0  ;;  %v905_v3 = vpop.f32.mrb[9].mxu0 }
 0x22e   :  { %v907_v4 = vpop.f32.mrb[10].mxu0 }
 0x22f   :  { %v908_v5 = vpop.f32.mrb[11].mxu0  ;;  %v923_v6 = vadd.f32 %v1089_v1, %v915_v2 }
 0x231   :  { %932 = vmax.xlane.f32.xlu0 %v923_v6 }
 0x2be   :  { %v933_v9 = vpop.xlane.xlu0 %932 }
 0x2bf   :  { %vm936_vm0 = vcmp.ge.f32.partialorder %v923_v6, %v933_v9 }
 0x2c0   :  { %v937_v10 = vsel %vm936_vm0, %v935_v8, 128 }
 0x2c1   :  { %v939_v11 = vshra.s32 %v937_v10, 16  ;;  %v938_v13 = vand.u32 65535, %v937_v10 }
 0x2c3   :  { %v941_v12 = vcvt.s32.f32 %v939_v11  ;;  %v940_v15 = vcvt.s32.f32 %v938_v13 }
 0x2c5   :  { %942 = vmin.xlane.f32.xlu1 %v941_v12 }
 0x352   :  { %v943_v14 = vpop.xlane.xlu1 %942 }
 0x353   :  { %vm944_vm1 = vcmp.eq.f32.partialorder %v941_v12, %v943_v14  ;;  %v949_v17 = vcvt.f32.s32 %v943_v14 }
 0x354   :  { %v945_v16 = vsel %vm944_vm1, %v940_v15, inf }
 0x355   :  { %946 = vmin.xlane.f32.xlu1 %v945_v16  ;;  %v950_v19 = vshll.u32 %v949_v17, 16 }
 0x3e2   :  { %v947_v18 = vpop.xlane.xlu1 %946 }
 0x3e3   :  { %v948_v20 = vcvt.f32.s32 %v947_v18 }
 0x3e5   :  { %v951_v21 = vadd.s32 %v950_v19, %v948_v20 }
 0x3e7   :  { %vm952_vm2 = vcmp.eq.s32.totalorder %v935_v8, %v951_v21 }
 0x3e8   :  { %v1091_v24 = vsel %vm952_vm2, 1.0, %v1412_v23 }
 0x3e9   :  { %v962_v25 = vmul.f32 %v1092_v22, %v1091_v24 }
 0x3eb   :  { %963 = vadd.xlane.f32.xlu0 %v962_v25 }
 0x3ec   :  { %1363 = shalt.err (!%p1360_p0)
}
 0x3ed   :  { %s1364_s2 = scalar_lea.hbm %s1549_s9, 128 }
 0x3ee   :  { %p1365_p1 = scmp.ne.s32.totalorder %s1549_s9, %s1364_s2  ;;  %p1368_p2 = scmp.lt.u32.totalorder %s1364_s2, %s1549_s9 }
 0x3f0   :  { %p1370_p3 = pnand %p1368_p2, %p1365_p1 }
 0x3f2   :  { %1373 = shalt.err (!%p1370_p3)
}
 0x3f3   :  { %997 = dma.vmem_to_hbm [thread:$0]  %s995_s30, 128, %s1549_s9, [#allocation11]   ;;  %v969_v27 = vstv %s1540_s0  ;;  %v1090_v29 = vld [vmem:[%s1547_s7] ss:$0 sm:$0xff]  ;;  %vm974_vm5 = vcmp.eq.s32.totalorder %v935_v8, 127 }
 0x3f4   :  { %vm970_vm3 = vcmp.ge.f32.partialorder %v933_v9, %v969_v27  ;;  %s1414_s22 = smov [#allocation9]   ;;  %v931_v31 = vadd.f32 %v1090_v29, %v905_v3 }
 0x3f5   :  { %s984_s1 = sshll.u32 %s1414_s22, 4  ;;  %v1094_v33 = vsel %vm970_vm3, 1.0, %v1412_v23  ;;  %s985_s1 = int_to_ptr.vmem [resolvable:$true] %s984_s1 }
 0x3f6   :  { %s1374_s9 = scalar_lea.vmem %s985_s1, 128  ;;  %p1379_p5 = scmp.lt.s32.totalorder %s985_s1, %s985_s1 }
 0x3f7   :  { %p1375_p4 = scmp.ne.s32.totalorder %s985_s1, %s1374_s9  ;;  %p1380_p6 = scmp.lt.s32.totalorder %s1374_s9, %s1374_s9 }
 0x3f9   :  { %p1381_p7 = por %p1380_p6, %p1379_p5 }
 0x3fb   :  { %p1382_p8 = pnand %p1381_p7, %p1375_p4 }
 0x478   :  { %v964_v26 = vpop.xlane.xlu0 %963 }
 0x479   :  { %v1183_v28 = vtrunc.f32 %v964_v26 }
 0x47b   :  { %v1184_v30 = vcvt.f32.s32 %v1183_v28 }
 0x47d   :  { %vm966_vm4 = vcmp.eq.s32.totalorder %v935_v8, %v1184_v30 }
 0x47e   :  { %v1093_v32 = vsel %vm966_vm4, 1.0, %v1412_v23 }
 0x47f   :  { %v973_v34 = vsel %vm970_vm3, %v1093_v32, %v931_v31 }
 0x480   :  { %v976_v35 = vsel %vm974_vm5, %v1094_v33, %v973_v34 }
 0x481   :  { %977 = vst [vmem:[#allocation9] sm:$0xff] %v976_v35 }
 0x482   :  { %1385 = shalt.err (!%p1382_p8)
}
 0x483   :  { %s1386_s23 = scalar_lea.hbm %s1548_s8, 128 }
 0x484   :  { %p1387_p9 = scmp.ne.s32.totalorder %s1548_s8, %s1386_s23  ;;  %p1390_p10 = scmp.lt.u32.totalorder %s1386_s23, %s1548_s8 }
 0x486   :  { %p1392_p11 = pnand %p1390_p10, %p1387_p9 }
 0x488   :  { %1395 = shalt.err (!%p1392_p11)
}
 0x489   :  { %987 = dma.vmem_to_hbm [thread:$0]  %s985_s1, 128, %s1548_s8, [#allocation5]  }
 0x48a   :  { %1400 = dma.done.wait [#allocation5], 128  }
 0x48b   :  { %1401 = vsyncadd [#allocation5], 4294967168 }
 0x48c   :  { %1402 = dma.done.wait [#allocation11], 128  }
 0x48d   :  { %1403 = vsyncadd [#allocation11], 4294967168 }
 0x48e   :  { %1004 = vsyncpa [#allocation4], 1 }
 0x48f   :  { %1005 = vsyncpa [#allocation7], 1 }
 0x490   :  { %1006 = vsyncpa [#allocation5], 1 }
 0x491   :  { %1007 = vsyncpa [#allocation11], 1 }

</bundles_post_ra>
